<compile_context>
chip_gen: v6e
topology: v6e:2x2x1
jax: 0.10.0
libtpu: 0.0.40
codegen_flags: <defaults>
</compile_context>

<pallas_src>
import functools

import jax
import jax.numpy as jnp
from jax.experimental import pallas as pl
from jax.experimental.pallas import tpu as pltpu


def _make_entropy_kernel(hw_total, tile_hw, inv_count):
    """Builds the kernel body; hw_total/tile_hw/inv_count are static."""
    need_col_mask = (hw_total % tile_hw) != 0

    def kernel(logits_ref, target_ref, out_ref, acc_ref):
        b = pl.program_id(0)
        t = pl.program_id(1)

        @pl.when(jnp.logical_and(b == 0, t == 0))
        def _init():
            acc_ref[...] = jnp.zeros_like(acc_ref)

        x = logits_ref[0].astype(jnp.float32)            # (C, tile_hw)
        tgt = target_ref[0]                              # (C, tile_hw), any dtype

        # Numerically stable, logsumexp-style formulation:
        #   -log( sum_c softmax(x)_c * mask_c )
        # = log( sum_c exp(x_c - m) ) - log( sum_c mask_c * exp(x_c - m) )
        m = jnp.max(x, axis=0, keepdims=True)            # (1, tile_hw)
        e = jnp.exp(x - m)                               # (C, tile_hw)
        denom = jnp.sum(e, axis=0, keepdims=True)        # (1, tile_hw)
        num = jnp.sum(jnp.where(tgt != 0, e, 0.0), axis=0, keepdims=True)
        loss = jnp.log(denom) - jnp.log(num)             # (1, tile_hw)

        if need_col_mask:
            # Zero out padded / out-of-range spatial columns of the last tile.
            col = t * tile_hw + jax.lax.broadcasted_iota(
                jnp.int32, (1, tile_hw), 1)
            loss = jnp.where(col < hw_total, loss, 0.0)

        # Lane-wise partial accumulation; cross-lane reduce only at the end.
        acc_ref[...] += loss

        @pl.when(jnp.logical_and(b == pl.num_programs(0) - 1,
                                 t == pl.num_programs(1) - 1))
        def _finalize():
            out_ref[0, 0] = jnp.sum(acc_ref[...]) * inv_count

    return kernel


def entropy_loss(logits, target):
    """logits, target: (B, C, H, W) arrays (NCHW, like PyTorch). Returns scalar."""
    assert logits.shape == target.shape
    B, C, H, W = logits.shape
    HW = H * W

    # Free reshape (no transpose): class axis stays second, H*W goes on lanes.
    lg = logits.reshape(B, C, HW)
    tg = target.reshape(B, C, HW)

    # Pick the spatial tile width: multiple of 128 lanes, sized so that
    # 2 inputs x 2 pipeline buffers fit comfortably in scoped VMEM on all gens
    # (~16 MiB total budget; v7x has only 64 MiB physical VMEM).
    per_col_bytes = C * (lg.dtype.itemsize + tg.dtype.itemsize)
    budget_bytes = 16 * 1024 * 1024          # total for both inputs, both buffers
    max_tile = max(128, (budget_bytes // (2 * per_col_bytes)) // 128 * 128)
    tile_hw = int(min(max_tile, pl.cdiv(HW, 128) * 128))
    grid = (B, pl.cdiv(HW, tile_hw))

    kernel = _make_entropy_kernel(HW, tile_hw, 1.0 / float(B * HW))

    out = pl.pallas_call(
        kernel,
        out_shape=jax.ShapeDtypeStruct((1, 1), jnp.float32),
        grid=grid,
        in_specs=[
            pl.BlockSpec((1, C, tile_hw), lambda b, t: (b, 0, t)),
            pl.BlockSpec((1, C, tile_hw), lambda b, t: (b, 0, t)),
        ],
        out_specs=pl.BlockSpec((1, 1), lambda b, t: (0, 0),
                               memory_space=pltpu.SMEM),
        scratch_shapes=[pltpu.VMEM((1, tile_hw), jnp.float32)],
        compiler_params=pltpu.CompilerParams(
            # Sequential scalar reduction into one accumulator -> arbitrary.
            # TODO(synk): on v7x, emit per-core partial sums + JAX mean to use
            # both TensorCores instead of a serial reduction.
            dimension_semantics=("arbitrary", "arbitrary"),
            vmem_limit_bytes=32 * 1024 * 1024,
        ),
    )(lg, tg)
    return out[0, 0]


def _reference(logits, target):
    p = jax.nn.softmax(logits.astype(jnp.float32), axis=1)
    p = jnp.where(target != 0, p, 0.0)
    s = jnp.sum(p, axis=1)
    return jnp.mean(-jnp.log(s))


if __name__ == "__main__":
    key = jax.random.PRNGKey(0)

    # ---- Test 1: aligned spatial extent (no tail masking) ----
    k_logits, k_cls, key = jax.random.split(key, 3)
    B, C, H, W = 2, 4, 16, 16
    logits = jax.random.normal(k_logits, (B, C, H, W), dtype=jnp.float32)
    cls = jax.random.randint(k_cls, (B, H, W), 0, C)
    target = jax.nn.one_hot(cls, C, axis=1, dtype=jnp.float32)     # (B, C, H, W)

    out = jax.block_until_ready(entropy_loss(logits, target))
    ref = _reference(logits, target)
    assert jnp.allclose(out, ref, atol=1e-5, rtol=1e-5), (out, ref)

    # ---- Test 2: ragged spatial extent + odd channel count (tail masking) ----
    k_logits2, k_cls2, key = jax.random.split(key, 3)
    B2, C2, H2, W2 = 2, 3, 10, 10
    logits2 = jax.random.normal(k_logits2, (B2, C2, H2, W2), dtype=jnp.float32)
    cls2 = jax.random.randint(k_cls2, (B2, H2, W2), 0, C2)
    target2 = jax.nn.one_hot(cls2, C2, axis=1, dtype=jnp.float32)

    out2 = jax.block_until_ready(entropy_loss(logits2, target2))
    ref2 = _reference(logits2, target2)
    assert jnp.allclose(out2, ref2, atol=1e-5, rtol=1e-5), (out2, ref2)

    print("KERNEL_OK")
</pallas_src>

<mosaic_0001>
module attributes {stable_mosaic.version = 11 : i64} {
  func.func @kernel(%arg0: i32, %arg1: i32, %arg2: memref<1x4x256xf32, #tpu.memory_space<vmem>>, %arg3: memref<1x4x256xf32, #tpu.memory_space<vmem>>, %arg4: memref<1x1xf32, #tpu.memory_space<smem>>, %arg5: memref<1x256xf32, #tpu.memory_space<vmem>>) attributes {dimension_semantics = [#tpu.dimension_semantics<arbitrary>, #tpu.dimension_semantics<arbitrary>], iteration_bounds = array<i64: 2, 1>, scalar_prefetch = 0 : i64, scratch_operands = 1 : i64, tpu.core_type = #tpu.core_type<tc>, window_params = [{transform_indices = @transform_0, window_bounds = array<i64: 1, 4, 256>}, {transform_indices = @transform_1, window_bounds = array<i64: 1, 4, 256>}, {transform_indices = @transform_2, window_bounds = array<i64: 1, 1>}]} {
    %c0_i32 = arith.constant 0 : i32
    %0 = arith.cmpi eq, %arg0, %c0_i32 : i32
    %c0_i32_0 = arith.constant 0 : i32
    %1 = arith.cmpi eq, %arg1, %c0_i32_0 : i32
    %2 = arith.andi %0, %1 : i1
    %3 = arith.extui %2 : i1 to i32
    %c0_i32_1 = arith.constant 0 : i32
    %4 = arith.cmpi ne, %3, %c0_i32_1 : i32
    scf.if %4 {
      %cst_17 = arith.constant 0.000000e+00 : f32
      %33 = vector.broadcast %cst_17 : f32 to vector<1x256xf32>
      %c0_18 = arith.constant 0 : index
      %c0_19 = arith.constant 0 : index
      %34 = vector.load %arg5[%c0_18, %c0_19] : memref<1x256xf32, #tpu.memory_space<vmem>>, vector<1x256xf32>
      tpu.vector_store %arg5[%c0_18, %c0_19], %33 {strides = array<i32>} : memref<1x256xf32, #tpu.memory_space<vmem>>, vector<1x256xf32>,
    } else {
    }
    %c0 = arith.constant 0 : index
    %c0_2 = arith.constant 0 : index
    %c0_3 = arith.constant 0 : index
    %5 = vector.load %arg2[%c0, %c0_2, %c0_3] : memref<1x4x256xf32, #tpu.memory_space<vmem>>, vector<1x4x256xf32>
    %6 = vector.shape_cast %5 : vector<1x4x256xf32> to vector<4x256xf32>
    %c0_4 = arith.constant 0 : index
    %c0_5 = arith.constant 0 : index
    %c0_6 = arith.constant 0 : index
    %7 = vector.load %arg3[%c0_4, %c0_5, %c0_6] : memref<1x4x256xf32, #tpu.memory_space<vmem>>, vector<1x4x256xf32>
    %8 = vector.shape_cast %7 : vector<1x4x256xf32> to vector<4x256xf32>
    %cst = arith.constant dense<0xFF800000> : vector<256xf32>
    %9 = vector.multi_reduction <maximumf>, %6, %cst [0] : vector<4x256xf32> to vector<256xf32>
    %10 = vector.shape_cast %9 : vector<256xf32> to vector<1x256xf32>
    %11 = vector.broadcast %10 : vector<1x256xf32> to vector<4x256xf32>
    %12 = arith.subf %6, %11 : vector<4x256xf32>
    %13 = math.exp %12 : vector<4x256xf32>
    %cst_7 = arith.constant dense<0.000000e+00> : vector<256xf32>
    %14 = vector.multi_reduction <add>, %13, %cst_7 [0] : vector<4x256xf32> to vector<256xf32>
    %15 = vector.shape_cast %14 : vector<256xf32> to vector<1x256xf32>
    %cst_8 = arith.constant 0.000000e+00 : f32
    %16 = vector.broadcast %cst_8 : f32 to vector<4x256xf32>
    %17 = arith.cmpf one, %8, %16 : vector<4x256xf32>
    %cst_9 = arith.constant 0.000000e+00 : f32
    %18 = vector.broadcast %cst_9 : f32 to vector<4x256xf32>
    %19 = arith.select %17, %13, %18 : vector<4x256xi1>, vector<4x256xf32>
    %cst_10 = arith.constant dense<0.000000e+00> : vector<256xf32>
    %20 = vector.multi_reduction <add>, %19, %cst_10 [0] : vector<4x256xf32> to vector<256xf32>
    %21 = vector.shape_cast %20 : vector<256xf32> to vector<1x256xf32>
    %22 = math.log %15 : vector<1x256xf32>
    %23 = math.log %21 : vector<1x256xf32>
    %24 = arith.subf %22, %23 : vector<1x256xf32>
    %c0_11 = arith.constant 0 : index
    %c0_12 = arith.constant 0 : index
    %25 = vector.load %arg5[%c0_11, %c0_12] : memref<1x256xf32, #tpu.memory_space<vmem>>, vector<1x256xf32>
    %26 = arith.addf %25, %24 : vector<1x256xf32>
    %c0_13 = arith.constant 0 : index
    %c0_14 = arith.constant 0 : index
    %27 = vector.load %arg5[%c0_13, %c0_14] : memref<1x256xf32, #tpu.memory_space<vmem>>, vector<1x256xf32>
    tpu.vector_store %arg5[%c0_13, %c0_14], %26 {strides = array<i32>} : memref<1x256xf32, #tpu.memory_space<vmem>>, vector<1x256xf32>,
    %c1_i32 = arith.constant 1 : i32
    %28 = arith.cmpi eq, %arg0, %c1_i32 : i32
    %c0_i32_15 = arith.constant 0 : i32
    %29 = arith.cmpi eq, %arg1, %c0_i32_15 : i32
    %30 = arith.andi %28, %29 : i1
    %31 = arith.extui %30 : i1 to i32
    %c0_i32_16 = arith.constant 0 : i32
    %32 = arith.cmpi ne, %31, %c0_i32_16 : i32
    scf.if %32 {
      %c0_17 = arith.constant 0 : index
      %c0_18 = arith.constant 0 : index
      %33 = vector.load %arg5[%c0_17, %c0_18] : memref<1x256xf32, #tpu.memory_space<vmem>>, vector<1x256xf32>
      %34 = vector.shape_cast %33 : vector<1x256xf32> to vector<1x1x256xf32>
      %cst_19 = arith.constant dense<0.000000e+00> : vector<1xf32>
      %35 = vector.multi_reduction <add>, %34, %cst_19 [1, 2] : vector<1x1x256xf32> to vector<1xf32>
      %36 = vector.shape_cast %35 : vector<1xf32> to vector<1x1x1xf32>
      %37 = vector.extract %36[0, 0, 0] : f32 from vector<1x1x1xf32>
      %cst_20 = arith.constant 0.001953125 : f32
      %38 = arith.mulf %37, %cst_20 : f32
      %c0_21 = arith.constant 0 : index
      %c0_22 = arith.constant 0 : index
      %39 = memref.load %arg4[%c0_21, %c0_22] : memref<1x1xf32, #tpu.memory_space<smem>>
      memref.store %38, %arg4[%c0_21, %c0_22] : memref<1x1xf32, #tpu.memory_space<smem>>
    } else {
    }
    return
  }
  func.func @transform_0(%arg0: i32, %arg1: i32) -> (i32, i32, i32) {
    %c0_i32 = arith.constant 0 : i32
    %c0_i32_0 = arith.constant 0 : i32
    return %arg0, %c0_i32, %arg1 : i32, i32, i32
  }
  func.func @transform_1(%arg0: i32, %arg1: i32) -> (i32, i32, i32) {
    %c0_i32 = arith.constant 0 : i32
    %c0_i32_0 = arith.constant 0 : i32
    return %arg0, %c0_i32, %arg1 : i32, i32, i32
  }
  func.func @transform_2(%arg0: i32, %arg1: i32) -> (i32, i32) {
    %c0_i32 = arith.constant 0 : i32
    %c0_i32_0 = arith.constant 0 : i32
    %c0_i32_1 = arith.constant 0 : i32
    return %c0_i32, %c0_i32_0 : i32, i32
  }
}

</mosaic_0001>

<bundles_post_ra>
// kernel: tpu_custom_call.1
= control target key start
LH: loop header
LB: loop body
LE: loop exit
PB: predicated region body
PF: predicated region fallthrough
CT: control target
= control target key end

     0   :  { %7 = vsyncpa [#allocation4], 0  ;;  %s835_s0 = inlined_call_operand.hbm [shape: f32[2,4,256], index: 0, kind: input, shape index: {}]   ;;  %s836_s1 = inlined_call_operand.hbm [shape: f32[2,4,256], index: 1, kind: input, shape index: {}]   ;;  %s837_s2 = inlined_call_operand.hbm [shape: f32[1,1], index: 2, kind: output, shape index: {}]  }
   0x1   :  { %9 = vsyncpa [#allocation4 + $0x1], 0 }
   0x2   :  { %10 = vsyncpa [#allocation7], 0 }
   0x3   :  { %12 = vsyncpa [#allocation7 + $0x1], 0 }
   0x4   :  { %13 = vsyncpa [#allocation5], 0  ;;  %s694_s9 = smov 0   ;;  %s696_s10 = smov 0  }
   0x5   :  { %s698_s11 = smov 0   ;;  %s700_s12 = smov 0  }
   0x6   :  { %s702_s13 = smov 0   ;;  %s704_s14 = smov 0  }
   0x7 LB: > { %s444_s15 = sadd.s32 4294967295, %s672_s14   ;;  %s31_s16 = sadd.s32 1, %s668_s13  ;;  %s672_s14 = sphi %s704_s14, %s19_s14   ;;  %s668_s13 = sphi %s702_s13, %s846_s13   ;;  %s664_s12 = sphi %s700_s12, %s845_s12   ;;  %s660_s11 = sphi %s698_s11, %s844_s11   ;;  %s656_s10 = sphi %s696_s10, %s843_s10   ;;  %s652_s9 = sphi %s694_s9, %s842_s9  }
   0x8   : > { %p33_p0 = scmp.ge.s32.totalorder %s31_s16, 2  ;;  %s40_s17 = sadd.s32 1, %s660_s11 }
   0x9   : > { %p47_p1 = scmp.ne.s32.totalorder %s660_s11, %s656_s10  ;;  %p48_p2 = scmp.eq.s32.totalorder %s672_s14, 0 }
   0xa   : > { %s848_s16 = smov (%p33_p0, %s31_s16), 0  ;;  %p53_p4 = scmp.ne.s32.totalorder %s656_s10, %s652_s9 }
   0xb   : > { %p730_p3 = por %p48_p2, %p47_p1  ;;  %s35_s19 = ssub.s32 %s668_s13, %s848_s16 }
   0xc   : > { %p54_p5 = scmp.eq.s32.totalorder %s444_s15, 0  ;;  %p38_p6 = scmp.eq.s32.totalorder %s35_s19, 0 }
   0xd   : > { %p483_p8 = scmp.lt.s32.totalorder %s672_s14, 2  ;;  %s748_s22 = sand.u32 1, %s660_s11  }
   0xe   : > { %p739_p7 = por %p54_p5, %p53_p4  ;;  %s462_s23 = sshll.u32 %s668_s13, 7 }
   0xf   : > { %s745_s21 = scalar_select %p38_p6, %s660_s11, %s40_s17  }
  0x10   : > { %s447_s24 = sshll.u32 %s748_s22, 3  ;;  %s138_s27 = scalar_lea.hbm %s835_s0, %s462_s23 }
  0x11   : > { %s130_s28 = scalar_lea.vmem [#allocation3], %s447_s24  ;;  %p757_p9 = pnand %p483_p8, %p730_p3 }
  0x12   : > { %s140_s29 = sshll.u32 %s130_s28, 4  ;;  %p453_p10 = scmp.ge.s32.totalorder %s672_s14, 1  ;;  %s141_s29 = int_to_ptr.vmem [resolvable:$true] %s140_s29 }
  0x13   : > { %p166_p11 = scmp.lt.s32.totalorder %s672_s14, 3  ;;  %s127_s3 = scalar_lea.sflag [#allocation4], %s748_s22 }
  0x14   : > { %p550_p12 = pneg %p757_p9  ;;  %s561_s4 = scalar_lea.vmem %s141_s29, 128 }
  0x15   : > { %p562_p13 = scmp.ne.s32.totalorder %s141_s29, %s561_s4  ;;  %s674_s5 = smov [#allocation3]  }
  0x16   : > { %s566_s6 = sshll.u32 %s674_s5, 4  ;;  %s567_s6 = int_to_ptr.vmem [resolvable:$false] %s566_s6 }
  0x17   : > { %p564_p0 = pnand %p562_p13, %p550_p12  ;;  %s568_s7 = scalar_lea.vmem %s567_s6, 256 }
  0x18   : > { %p569_p2 = scmp.lt.s32.totalorder %s141_s29, %s567_s6  ;;  %p570_p3 = scmp.lt.s32.totalorder %s568_s7, %s561_s4 }
  0x19   : > { %p565_p1 = pneg %p564_p0 }
  0x1a   : > { %p571_p4 = por %p570_p3, %p569_p2 }
  0x1c   : > { %p572_p5 = pnand %p571_p4, %p565_p1 }
  0x1e   : > { %575 = shalt.err (!%p572_p5)
}
  0x1f   : > { %479 = dma.hbm_to_vmem [thread:$0]  (!%p757_p9), %s138_s27, 128, %s141_s29, %s127_s3  }
  0x20   : > { %p775_p6 = pnand %p453_p10, %p166_p11  ;;  %s159_s18 = scalar_lea.hbm %s836_s1, %s462_s23 }
  0x21   : > { %s151_s19 = scalar_lea.vmem [#allocation6], %s447_s24  ;;  %s148_s26 = scalar_lea.sflag [#allocation7], %s748_s22 }
  0x22   : > { %s161_s25 = sshll.u32 %s151_s19, 4  ;;  %s675_s27 = smov [#allocation6]   ;;  %s162_s25 = int_to_ptr.vmem [resolvable:$true] %s161_s25 }
  0x23   : > { %s589_s28 = scalar_lea.vmem %s162_s25, 128  ;;  %s594_s29 = sshll.u32 %s675_s27, 4  ;;  %s595_s29 = int_to_ptr.vmem [resolvable:$false] %s594_s29 }
  0x24   : > { %p590_p8 = scmp.ne.s32.totalorder %s162_s25, %s589_s28  ;;  %s596_s3 = scalar_lea.vmem %s595_s29, 256 }
  0x25   : > { %p597_p10 = scmp.lt.s32.totalorder %s162_s25, %s595_s29  ;;  %p598_p11 = scmp.lt.s32.totalorder %s596_s3, %s589_s28 }
  0x26   : > { %p592_p13 = pnand %p590_p8, %p550_p12 }
  0x27   : > { %p599_p1 = por %p598_p11, %p597_p10 }
  0x28   : > { %p593_p0 = pneg %p592_p13 }
  0x2a   : > { %p600_p2 = pnand %p599_p1, %p593_p0 }
  0x2c   : > { %603 = shalt.err (!%p600_p2)
}
  0x2d   : > { %482 = dma.hbm_to_vmem [thread:$0]  (!%p757_p9), %s159_s18, 128, %s162_s25, %s148_s26  }
  0x2e   : > { %170 = sbr.rel (%p775_p6) target bundleno = 361 (0x169), region = 28  ;;  %s172_s22 = sand.u32 (!%p775_p6), 1, %s656_s10  }
  0x2f   : > { %s454_s23 = sshll.u32 (!%p775_p6), %s172_s22, 3  ;;  %s173_s24 = scalar_lea.sflag (!%p775_p6), [#allocation4], %s172_s22 }
  0x30   : > { %s176_s4 = scalar_lea.vmem (!%p775_p6), [#allocation3], %s454_s23 }
  0x33   : > { %639 = dma.done.wait (%p739_p7), %s173_s24, 128  }
  0x34   : > { %641 = vsyncadd (%p739_p7), %s173_s24, 4294967168  ;;  %s182_s5 = scalar_lea.sflag [#allocation7], %s172_s22  ;;  %s795_s6 = scalar_lea.vmem [#allocation6], %s454_s23 }
  0x35   : > { %643 = dma.done.wait (%p739_p7), %s182_s5, 128  }
  0x36   : > { %645 = vsyncadd (%p739_p7), %s182_s5, 4294967168  ;;  %p208_p9 = scmp.eq.s32.totalorder %s664_s12, 0 }
  0x37   : > { %v214_v0 = vlaneseq (%p208_p9)  ;;  %v676_v1 = vmov (%p208_p9), 0.0  }
  0x38   : > { %213 = sbr.rel (!%p208_p9) target bundleno = 61 (0x3d), region = 40 }
  0x39   : > { %vm216_vm0 = vcmp.lt.s32.totalorder (%p208_p9), %v214_v0, 256 }
  0x3a   : > { %218 = vst.msk [vmem:[#allocation2] sm:$0x3] (%p208_p9), %vm216_vm0, %v676_v1 }
  0x3d PF: > { %v219_v2 = vld [vmem:[%s176_s4] sm:$0xff]  ;;  %vm224_vm1 = vcmask 1043456   ;;  %p317_p12 = scmp.eq.s32.totalorder %s664_s12, 1  ;;  %v220_v21 = vld [vmem:[%s795_s6] sm:$0xff]  ;;  %v677_v54 = vmov 1966171168   ;;  %v299_v56 = vlaneseq }
  0x3e   : > { %v222_v3 = vcombine.high %v219_v2, %v219_v2  ;;  %v225_v4 = vsel %vm224_vm1, %v219_v2, -inf  ;;  %vm263_vm2 = vcmp.ne.f32.partialorder %v220_v21, 0.0  ;;  %v297_v55 = vunpack.c.l.s4 %v677_v54 }
  0x3f   : > { %v226_v5 = vrot.slane %v225_v4, 4  ;;  %v300_v63 = vshrl.u32 %v299_v56, 7  ;;  %vm314_vm3 = vcmp.lt.s32.totalorder %v299_v56, 256  ;;  %vm334_vm4 = vcmask (%p317_p12), 1040384  }
  0x40   : > { %v232_v6 = vsel %vm224_vm1, %v222_v3, -inf  ;;  %v298_v62 = vunpack.c.0.s8 %v297_v55 }
  0x41   : > { %v227_v7 = vmax.f32 %v225_v4, %v226_v5  ;;  %v233_v8 = vrot.slane %v232_v6, 4 }
  0x42   : > { %v301_v5 = vsub.s32 %v298_v62, %v300_v63 }
  0x43   : > { %v228_v9 = vrot.slane %v227_v7, 2  ;;  %v234_v10 = vmax.f32 %v232_v6, %v233_v8  ;;  %v292_v8 = vld [vmem:[#allocation2] sm:$0x3] }
  0x45   : > { %v229_v11 = vmax.f32 %v227_v7, %v228_v9  ;;  %v235_v12 = vrot.slane %v234_v10, 2 }
  0x47   : > { %v230_v13 = vrot.slane %v229_v11, 1  ;;  %v236_v14 = vmax.f32 %v234_v10, %v235_v12  ;;  %v326_v12 = vsub.s32 (%p317_p12), 0, %v300_v63 }
  0x49   : > { %v231_v15 = vmax.f32 %v229_v11, %v230_v13  ;;  %v237_v16 = vrot.slane %v236_v14, 1  ;;  %v330_v13 = vsub.s32 (%p317_p12), 1, %v300_v63 }
  0x4b   : > { %v238_v17 = vmax.f32 %v236_v14, %v237_v16 }
  0x4d   : > { %v241_v18 = vcombine.low %v231_v15, %v238_v17 }
  0x4f   : > { %v243_v19 = vsub.f32 %v219_v2, %v241_v18 }
  0x51   : > { %v244_v20 = vmul.f32 1.442695, %v243_v19 }
  0x53   : > { %538 = vpow2.f32 %v244_v20 }
  0x60   : > { %v539_v22 = vpop.eup %538 }
  0x61   : > { %v247_v23 = vcombine.high %v539_v22, %v539_v22  ;;  %v249_v24 = vsel %vm224_vm1, %v539_v22, 0.0  ;;  %v264_v25 = vsel %vm263_vm2, %v539_v22, 0.0 }
  0x62   : > { %v250_v26 = vrot.slane %v249_v24, 4  ;;  %v266_v27 = vcombine.high %v264_v25, %v264_v25  ;;  %v268_v28 = vsel %vm224_vm1, %v264_v25, 0.0 }
  0x63   : > { %v256_v29 = vsel %vm224_vm1, %v247_v23, 0.0  ;;  %v269_v30 = vrot.slane %v268_v28, 4 }
  0x64   : > { %v251_v31 = vadd.f32 %v250_v26, %v249_v24  ;;  %v257_v32 = vrot.slane %v256_v29, 4  ;;  %v275_v33 = vsel %vm224_vm1, %v266_v27, 0.0 }
  0x65   : > { %v270_v34 = vadd.f32 %v269_v30, %v268_v28  ;;  %v276_v35 = vrot.slane %v275_v33, 4 }
  0x66   : > { %v252_v36 = vrot.slane %v251_v31, 2  ;;  %v258_v37 = vadd.f32 %v257_v32, %v256_v29 }
  0x67   : > { %v271_v38 = vrot.slane %v270_v34, 2  ;;  %v277_v39 = vadd.f32 %v276_v35, %v275_v33 }
  0x68   : > { %v253_v40 = vadd.f32 %v252_v36, %v251_v31  ;;  %v259_v41 = vrot.slane %v258_v37, 2 }
  0x69   : > { %v272_v42 = vadd.f32 %v271_v38, %v270_v34  ;;  %v278_v43 = vrot.slane %v277_v39, 2 }
  0x6a   : > { %v254_v44 = vrot.slane %v253_v40, 1  ;;  %v260_v45 = vadd.f32 %v259_v41, %v258_v37 }
  0x6b   : > { %v273_v46 = vrot.slane %v272_v42, 1  ;;  %v279_v47 = vadd.f32 %v278_v43, %v277_v39 }
  0x6c   : > { %v255_v48 = vadd.f32 %v254_v44, %v253_v40  ;;  %v261_v49 = vrot.slane %v260_v45, 1 }
  0x6d   : > { %v274_v50 = vadd.f32 %v273_v46, %v272_v42  ;;  %v280_v51 = vrot.slane %v279_v47, 1 }
  0x6e   : > { %v262_v52 = vadd.f32 %v261_v49, %v260_v45  ;;  %540 = vlog2.f32 %v255_v48 }
  0x6f   : > { %v281_v53 = vadd.f32 %v280_v51, %v279_v47  ;;  %542 = vlog2.f32 %v274_v50 }
  0x70   : > { %544 = vlog2.f32 %v262_v52 }
  0x71   : > { %546 = vlog2.f32 %v281_v53 }
  0x7b   : > { %v541_v57 = vpop.eup %540 }
  0x7c   : > { %v543_v58 = vpop.eup %542  ;;  %v283_v59 = vmul.f32 0.6931472, %v541_v57 }
  0x7d   : > { %v545_v60 = vpop.eup %544  ;;  %v287_v61 = vmul.f32 0.6931472, %v543_v58 }
  0x7e   : > { %v547_v0 = vpop.eup %546  ;;  %v285_v1 = vmul.f32 0.6931472, %v545_v60 }
  0x7f   : > { %v289_v2 = vmul.f32 0.6931472, %v547_v0  ;;  %v290_v3 = vsub.f32 %v283_v59, %v287_v61 }
  0x81   : > { %v291_v4 = vsub.f32 %v285_v1, %v289_v2 }
  0x83   : > { %v295_v6 = vcombine.low %v290_v3, %v291_v4 }
  0x85   : > { %v302_v7 = vrot.slane %v295_v6, %v301_v5 }
  0x87   : > { %v309_v9 = vrot.slane %v302_v7, %v301_v5  ;;  %321 = sbr.rel (!%p317_p12) target bundleno = 355 (0x163), region = 44 }
  0x89   : > { %v311_v10 = vadd.f32 %v309_v9, %v292_v8 }
  0x8b   : > { %316 = vst.msk [vmem:[#allocation2] sm:$0x3] %vm314_vm3, %v311_v10 }
  0x92   : > { %v322_v11 = vld [vmem:[#allocation2] sm:$0x3] }
  0x93   : > { %v327_v14 = vrot.slane %v322_v11, %v326_v12  ;;  %v331_v15 = vrot.slane %v322_v11, %v330_v13 }
  0x95   : > { %v335_v16 = vsel %vm334_vm4, %v327_v14, 0.0  ;;  %v336_v17 = vsel %vm334_vm4, %v331_v15, 0.0 }
  0x96   : > { %v337_v18 = vadd.f32 %v336_v17, %v335_v16 }
  0x98   : > { %338 = vadd.xlane.f32.xlu0 %v337_v18 }
 0x121   : > { %v339_v19 = vpop.xlane.xlu0 %338 }
 0x122   : > { %v340_v20 = vrot.slane %v339_v19, 4 }
 0x124   : > { %v341_v21 = vadd.f32 %v340_v20, %v339_v19 }
 0x126   : > { %v342_v22 = vrot.slane %v341_v21, 2 }
 0x128   : > { %v343_v23 = vadd.f32 %v342_v22, %v341_v21 }
 0x12a   : > { %v344_v24 = vrot.slane %v343_v23, 1 }
 0x12c   : > { %v345_v25 = vadd.f32 %v344_v24, %v343_v23 }
 0x12e   : > { %466 = vpush %v345_v25 }
 0x15f   : > { %s467_s12 = spop %466 }
 0x160   : > { %s347_s20 = smul.f32 0.001953125, %s467_s12 }
 0x162   : > { %349 = sst [smem:[#allocation8]] %s347_s20 }
 0x163 PF: > { %p484_p7 = scmp.eq.s32.totalorder %s444_s15, 1  ;;  %s678_s30 = smov [#allocation8]  }
 0x165   : > { %473 = dma.smem_to_hbm (%p484_p7), %s678_s30, 16, %s837_s2, [#allocation5]  }
 0x166   : > { %647 = dma.done.wait (%p484_p7), [#allocation5], 16  }
 0x167   : > { %649 = vsyncadd (%p484_p7), [#allocation5], 4294967280 }
 0x168   : > { %363 = sfence }
 0x169 PF: > { %s19_s14 = sadd.s32 1, %s672_s14   ;;  %s842_s9 = smov %s656_s10 }
 0x16a   : > { %p16_p3 = scmp.ge.s32.totalorder %s19_s14, 4   ;;  %s843_s10 = smov %s660_s11 }
 0x16b   : > { %s844_s11 = smov %s745_s21  ;;  %s845_s12 = smov %s668_s13 }
 0x16c   : > { %s846_s13 = smov %s848_s16  ;;  %18 = sbr.rel (!%p16_p3) target bundleno = 7 (0x7), region = 87 }
 0x171   :  { %369 = vsyncpa [#allocation4], 1 }
 0x172   :  { %371 = vsyncpa [#allocation4 + $0x1], 1 }
 0x173   :  { %372 = vsyncpa [#allocation7], 1 }
 0x174   :  { %374 = vsyncpa [#allocation7 + $0x1], 1 }
 0x175   :  { %375 = vsyncpa [#allocation5], 1 }
 0x176   :  { %377 = vsyncpa [#allocation5 + $0x1], 1 }

</bundles_post_ra>
